<compile_context>
chip_gen: v6e
topology: v6e:2x2x1
jax: 0.10.0
libtpu: 0.0.40
codegen_flags: <defaults>
</compile_context>

<pallas_src>
import math
from functools import partial

import jax
import jax.numpy as jnp
from jax import lax
from jax.experimental import pallas as pl
from jax.experimental.pallas import tpu as pltpu

_VMEM_LIMIT = 48 * 1024 * 1024  # fits v7x's 64 MiB physical VMEM with headroom


def _pick_tile(n, target, align):
    """Largest multiple of `align` <= target that divides `n`, else the full
    dim (a full-extent block is always a legal BlockSpec)."""
    if n <= target:
        return n
    t = (target // align) * align
    while t >= align:
        if n % t == 0:
            return t
        t -= align
    return n


def _swap_halves(x):
    # rotate-half (== pltpu.roll(x, D//2, axis=-1)); explicit lane slices also
    # handle head_dim < 128 cleanly.
    h = x.shape[-1] // 2
    return jnp.concatenate([x[..., h:], x[..., :h]], axis=-1)


# ----------------------------- tiled linear (x @ w.T) -----------------------------
def _linear_kernel(x_ref, w_ref, o_ref, acc_ref):
    @pl.when(pl.program_id(2) == 0)
    def _():
        acc_ref[...] = jnp.zeros(acc_ref.shape, acc_ref.dtype)

    acc_ref[...] += lax.dot_general(
        x_ref[...], w_ref[...],
        dimension_numbers=(((1,), (1,)), ((), ())),     # x @ w.T, no host transpose
        preferred_element_type=jnp.float32)

    @pl.when(pl.program_id(2) == pl.num_programs(2) - 1)
    def _():
        o_ref[...] = acc_ref[...].astype(o_ref.dtype)


def pallas_linear(x2d, w):
    """y = x2d @ w.T   (nn.Linear, bias=False).  x2d: (M, K), w: (N, K)."""
    M, K = x2d.shape
    N, K2 = w.shape
    assert K == K2
    tm = _pick_tile(M, 256, 8)
    tn = _pick_tile(N, 256, 128)
    tk = _pick_tile(K, 512, 128)
    nbytes = x2d.dtype.itemsize
    cost = pl.CostEstimate(flops=2 * M * N * K, transcendentals=0,
                           bytes_accessed=(M * K + N * K + M * N) * nbytes)
    return pl.pallas_call(
        _linear_kernel,
        out_shape=jax.ShapeDtypeStruct((M, N), x2d.dtype),
        grid=(M // tm, N // tn, K // tk),
        in_specs=[
            pl.BlockSpec((tm, tk), lambda i, j, k: (i, k)),
            pl.BlockSpec((tn, tk), lambda i, j, k: (j, k)),
        ],
        out_specs=pl.BlockSpec((tm, tn), lambda i, j, k: (i, j)),
        scratch_shapes=[pltpu.VMEM((tm, tn), jnp.float32)],
        compiler_params=pltpu.CompilerParams(
            dimension_semantics=("parallel", "parallel", "arbitrary"),
            vmem_limit_bytes=_VMEM_LIMIT),
        cost_estimate=cost,
    )(x2d, w)


# ------------------------- flash attention (GQA + RoPE) ---------------------------
def _flash_attn_kernel(q_ref, k_ref, v_ref, csq_ref, cwq_ref, csk_ref, cwk_ref,
                       o_ref, qrot_ref, m_ref, l_ref, acc_ref, *, scale, causal):
    _, _, hpg, tq, D = q_ref.shape
    tk = k_ref.shape[2]
    qi = pl.program_id(2)
    ki = pl.program_id(3)

    @pl.when(ki == 0)
    def _init():
        m_ref[...] = jnp.full(m_ref.shape, -jnp.inf, jnp.float32)
        l_ref[...] = jnp.zeros(l_ref.shape, jnp.float32)
        acc_ref[...] = jnp.zeros(acc_ref.shape, jnp.float32)
        # RoPE on the query tile, once per (batch, kv_head, q_tile).
        q = q_ref[0, 0].astype(jnp.float32)                         # (hpg, tq, D)
        q_rot = q * csq_ref[...] + _swap_halves(q) * cwq_ref[...]
        qrot_ref[...] = q_rot.reshape(hpg * tq, D).astype(qrot_ref.dtype)

    def _compute():
        # RoPE on the key tile: once per kv head, shared by all hpg query heads.
        k = k_ref[0, 0].astype(jnp.float32)                         # (tk, D)
        k_rot = (k * csk_ref[...] + _swap_halves(k) * cwk_ref[...]
                 ).astype(k_ref.dtype)
        s = lax.dot_general(qrot_ref[...], k_rot,
                            dimension_numbers=(((1,), (1,)), ((), ())),
                            preferred_element_type=jnp.float32)      # (hpg*tq, tk)
        s = (s * scale).reshape(hpg, tq, tk)
        if causal:
            qpos = qi * tq + lax.broadcasted_iota(jnp.int32, (tq, tk), 0)
            kpos = ki * tk + lax.broadcasted_iota(jnp.int32, (tq, tk), 1)
            s = jnp.where((kpos <= qpos)[None], s, -jnp.inf)
        m_prev = m_ref[...]                                          # (hpg, tq, 1)
        m_new = jnp.maximum(m_prev, jnp.max(s, axis=-1, keepdims=True))
        alpha = jnp.exp(m_prev - m_new)
        p = jnp.exp(s - m_new)                                       # (hpg, tq, tk)
        l_ref[...] = alpha * l_ref[...] + jnp.sum(p, axis=-1, keepdims=True)
        pv = lax.dot_general(
            p.reshape(hpg * tq, tk).astype(v_ref.dtype), v_ref[0, 0],
            dimension_numbers=(((1,), (0,)), ((), ())),
            preferred_element_type=jnp.float32)                      # (hpg*tq, D)
        acc_ref[...] = alpha * acc_ref[...] + pv.reshape(hpg, tq, D)
        m_ref[...] = m_new

    if causal:
        # Skip kv tiles entirely in the masked future of this q tile.
        @pl.when(ki * tk <= qi * tq + (tq - 1))
        def _():
            _compute()
    else:
        _compute()

    @pl.when(ki == pl.num_programs(3) - 1)
    def _finalize():
        inv_l = pl.reciprocal(l_ref[...], approx=True)               # EUP slot
        o_ref[0, 0] = (acc_ref[...] * inv_l).astype(o_ref.dtype)


def pallas_flash_attention(q5, k4, v4, cs, cw, *, scale, causal):
    """q5: (B, Hkv, hpg, S, D); k4/v4: (B, Hkv, S, D); cs/cw: (S, D)."""
    B, Hkv, hpg, S, D = q5.shape
    tq = _pick_tile(S, 256, 8)
    tk = _pick_tile(S, 512, 8)
    H = Hkv * hpg
    nbytes = q5.dtype.itemsize
    cost = pl.CostEstimate(
        flops=4 * B * H * S * S * D,
        transcendentals=B * H * S * S,
        bytes_accessed=int(2 * q5.size + k4.size + v4.size) * nbytes)
    kernel = partial(_flash_attn_kernel, scale=scale, causal=causal)
    return pl.pallas_call(
        kernel,
        out_shape=jax.ShapeDtypeStruct((B, Hkv, hpg, S, D), q5.dtype),
        grid=(B, Hkv, S // tq, S // tk),
        in_specs=[
            pl.BlockSpec((1, 1, hpg, tq, D), lambda b, h, qi, ki: (b, h, 0, qi, 0)),
            pl.BlockSpec((1, 1, tk, D), lambda b, h, qi, ki: (b, h, ki, 0)),
            pl.BlockSpec((1, 1, tk, D), lambda b, h, qi, ki: (b, h, ki, 0)),
            pl.BlockSpec((tq, D), lambda b, h, qi, ki: (qi, 0)),  # cs for q tile
            pl.BlockSpec((tq, D), lambda b, h, qi, ki: (qi, 0)),  # cw for q tile
            pl.BlockSpec((tk, D), lambda b, h, qi, ki: (ki, 0)),  # cs for k tile
            pl.BlockSpec((tk, D), lambda b, h, qi, ki: (ki, 0)),  # cw for k tile
        ],
        out_specs=pl.BlockSpec((1, 1, hpg, tq, D),
                               lambda b, h, qi, ki: (b, h, 0, qi, 0)),
        scratch_shapes=[
            pltpu.VMEM((hpg * tq, D), q5.dtype),     # rotated q tile
            pltpu.VMEM((hpg, tq, 1), jnp.float32),   # running max
            pltpu.VMEM((hpg, tq, 1), jnp.float32),   # running denom
            pltpu.VMEM((hpg, tq, D), jnp.float32),   # output accumulator
        ],
        compiler_params=pltpu.CompilerParams(
            dimension_semantics=("parallel", "parallel", "parallel", "arbitrary"),
            vmem_limit_bytes=_VMEM_LIMIT),
        cost_estimate=cost,
    )(q5, k4, v4, cs, cw, cs, cw)


# ------------------------------ module forward --------------------------------
def attention_forward(x, freq_cis, params, *, n_heads, n_kv_heads, head_dim,
                      mask=None):
    B, S, dim = x.shape
    D = head_dim
    hpg = n_heads // n_kv_heads
    Nq = n_heads * D
    Nkv = n_kv_heads * D

    # Permute each head's (even, odd) RoPE pairs into half-split order by
    # permuting wq/wk rows, so the rotation becomes a rotate-half.  QK^T is
    # invariant to this per-head permutation; V and wo are untouched.
    perm_in = jnp.concatenate([jnp.arange(0, D, 2), jnp.arange(1, D, 2)])

    def permute_rows(w, n_h):
        return w.reshape(n_h, D, dim)[:, perm_in, :].reshape(n_h * D, dim)

    w_qkv = jnp.concatenate([permute_rows(params["wq"], n_heads),
                             permute_rows(params["wk"], n_kv_heads),
                             params["wv"]], axis=0)

    # Fused QKV projection: x is streamed from HBM once.
    x2d = x.reshape(B * S, dim)
    qkv = pallas_linear(x2d, w_qkv)                       # (B*S, Nq + 2*Nkv)
    xq = qkv[:, :Nq].reshape(B, S, n_heads, D)
    xk = qkv[:, Nq:Nq + Nkv].reshape(B, S, n_kv_heads, D)
    xv = qkv[:, Nq + Nkv:].reshape(B, S, n_kv_heads, D)

    # Group query heads with their kv head: (B, Hkv, hpg, S, D) / (B, Hkv, S, D).
    # TODO(synk): for production head_dim >= 128 these transposes can be folded
    # into the attention BlockSpecs (slice (B, S, H*D) directly); at head_dim=16
    # such blocks violate the (8, 128) tiling rule, so keep XLA glue here.
    q5 = xq.transpose(0, 2, 1, 3).reshape(B, n_kv_heads, hpg, S, D)
    k4 = xk.transpose(0, 2, 1, 3)
    v4 = xv.transpose(0, 2, 1, 3)

    # RoPE coefficients in half-split order: rot(y) = y * cs + swap_halves(y) * cw
    f = freq_cis[:S].astype(jnp.float32)                  # (S, D/2, 2, 2)
    cs = jnp.concatenate([f[:, :, 0, 0], f[:, :, 1, 1]], axis=-1)   # (S, D)
    cw = jnp.concatenate([f[:, :, 0, 1], f[:, :, 1, 0]], axis=-1)   # (S, D)

    out5 = pallas_flash_attention(q5, k4, v4, cs, cw,
                                  scale=1.0 / math.sqrt(D),
                                  causal=(mask == "causal"))

    out2d = (out5.reshape(B, n_heads, S, D)
                 .transpose(0, 2, 1, 3)
                 .reshape(B * S, n_heads * D))
    return pallas_linear(out2d, params["wo"]).reshape(B, S, dim)


# ------------------------------ pure-JAX reference -----------------------------
def reference_forward(x, freq_cis, params, *, n_heads, n_kv_heads, head_dim,
                      mask=None):
    with jax.default_matmul_precision("highest"):
        wq, wk, wv, wo = params["wq"], params["wk"], params["wv"], params["wo"]
        B, S, dim = x.shape
        xq = (x @ wq.T).reshape(B, S, n_heads, head_dim)
        xk = (x @ wk.T).reshape(B, S, n_kv_heads, head_dim)
        xv = (x @ wv.T).reshape(B, S, n_kv_heads, head_dim)

        f = freq_cis[:S].reshape(1, S, 1, head_dim // 2, 2, 2).astype(jnp.float32)

        def rope(t):
            t_ = t.reshape(*t.shape[:-1], head_dim // 2, 1, 2)
            return (t_ * f).sum(-1).reshape(t.shape)

        xq, xk = rope(xq), rope(xk)
        hpg = n_heads // n_kv_heads
        xk = jnp.repeat(xk, hpg, axis=2)
        xv = jnp.repeat(xv, hpg, axis=2)
        q, k, v = (t.transpose(0, 2, 1, 3) for t in (xq, xk, xv))
        s = jnp.einsum("bhqd,bhkd->bhqk", q, k) / math.sqrt(head_dim)
        if mask == "causal":
            tri = jnp.tril(jnp.ones((S, S), bool))
            s = jnp.where(tri, s, -jnp.inf)
        p = jax.nn.softmax(s, axis=-1)
        o = jnp.einsum("bhqk,bhkd->bhqd", p, v)
        o = o.transpose(0, 2, 1, 3).reshape(B, S, n_heads * head_dim)
        return (o @ wo.T).reshape(B, S, dim)


# ----------------------------------- main --------------------------------------
if __name__ == "__main__":
    B, S, DIM = 2, 8, 32
    HEAD_DIM, N_HEADS, N_KV_HEADS = 16, 4, 2
    ROPE_THETA = 10000.0

    key = jax.random.PRNGKey(0)
    kx, kq, kk, kv, ko = jax.random.split(key, 5)
    std = DIM ** -0.5

    def trunc_init(k, shape, s):
        return s * jax.random.truncated_normal(k, -3.0, 3.0, shape, jnp.float32)

    params = {
        "wq": trunc_init(kq, (N_HEADS * HEAD_DIM, DIM), std),
        "wk": trunc_init(kk, (N_KV_HEADS * HEAD_DIM, DIM), std),
        "wv": trunc_init(kv, (N_KV_HEADS * HEAD_DIM, DIM), std),
        "wo": trunc_init(ko, (DIM, N_HEADS * HEAD_DIM), std),
    }
    x = jax.random.normal(kx, (B, S, DIM), jnp.float32)

    # freq_cis: (S, head_dim // 2, 2, 2) per-position 2x2 rotation matrices
    inv_freq = 1.0 / (ROPE_THETA ** (
        jnp.arange(0, HEAD_DIM, 2, dtype=jnp.float32) / HEAD_DIM))
    t = jnp.arange(S, dtype=jnp.float32)
    ang = jnp.outer(t, inv_freq)
    cos, sin = jnp.cos(ang), jnp.sin(ang)
    freq_cis = jnp.stack(
        [jnp.stack([cos, -sin], axis=-1), jnp.stack([sin, cos], axis=-1)],
        axis=-2)  # (S, D/2, 2, 2)

    for mask in (None, "causal"):
        out = attention_forward(x, freq_cis, params, n_heads=N_HEADS,
                                n_kv_heads=N_KV_HEADS, head_dim=HEAD_DIM,
                                mask=mask)
        out = jax.block_until_ready(out)
        ref = reference_forward(x, freq_cis, params, n_heads=N_HEADS,
                                n_kv_heads=N_KV_HEADS, head_dim=HEAD_DIM,
                                mask=mask)
        assert out.shape == (B, S, DIM)
        err = float(jnp.max(jnp.abs(out - ref)))
        assert jnp.allclose(out, ref, atol=3e-2, rtol=3e-2), f"max_abs_err={err}"

    print("KERNEL_OK")
</pallas_src>

<mosaic_0001>
module attributes {stable_mosaic.version = 11 : i64} {
  func.func @_linear_kernel(%arg0: i32, %arg1: i32, %arg2: i32, %arg3: memref<16x32xf32, #tpu.memory_space<vmem>>, %arg4: memref<128x32xf32, #tpu.memory_space<vmem>>, %arg5: memref<16x128xf32, #tpu.memory_space<vmem>>, %arg6: memref<16x128xf32, #tpu.memory_space<vmem>>) attributes {dimension_semantics = [#tpu.dimension_semantics<parallel>, #tpu.dimension_semantics<parallel>, #tpu.dimension_semantics<arbitrary>], iteration_bounds = array<i64: 1, 1, 1>, scalar_prefetch = 0 : i64, scratch_operands = 1 : i64, tpu.core_type = #tpu.core_type<tc>, window_params = [{transform_indices = @transform_0, window_bounds = array<i64: 16, 32>}, {transform_indices = @transform_1, window_bounds = array<i64: 128, 32>}, {transform_indices = @transform_2, window_bounds = array<i64: 16, 128>}]} {
    %c0_i32 = arith.constant 0 : i32
    %0 = arith.cmpi eq, %arg2, %c0_i32 : i32
    %1 = arith.extui %0 : i1 to i32
    %c0_i32_0 = arith.constant 0 : i32
    %2 = arith.cmpi ne, %1, %c0_i32_0 : i32
    scf.if %2 {
      %cst_10 = arith.constant 0.000000e+00 : f32
      %12 = vector.broadcast %cst_10 : f32 to vector<16x128xf32>
      %c0_11 = arith.constant 0 : index
      %c0_12 = arith.constant 0 : index
      %13 = vector.load %arg6[%c0_11, %c0_12] : memref<16x128xf32, #tpu.memory_space<vmem>>, vector<16x128xf32>
      tpu.vector_store %arg6[%c0_11, %c0_12], %12 {strides = array<i32>} : memref<16x128xf32, #tpu.memory_space<vmem>>, vector<16x128xf32>,
    } else {
    }
    %c0 = arith.constant 0 : index
    %c0_1 = arith.constant 0 : index
    %3 = vector.load %arg6[%c0, %c0_1] : memref<16x128xf32, #tpu.memory_space<vmem>>, vector<16x128xf32>
    %c0_2 = arith.constant 0 : index
    %c0_3 = arith.constant 0 : index
    %4 = vector.load %arg3[%c0_2, %c0_3] : memref<16x32xf32, #tpu.memory_space<vmem>>, vector<16x32xf32>
    %c0_4 = arith.constant 0 : index
    %c0_5 = arith.constant 0 : index
    %5 = vector.load %arg4[%c0_4, %c0_5] : memref<128x32xf32, #tpu.memory_space<vmem>>, vector<128x32xf32>
    %cst = arith.constant dense<0.000000e+00> : vector<16x128xf32>
    %6 = tpu.matmul %4, %5, %cst {dimension_numbers = #tpu.dot_dimension_numbers<[1], [1], [0], [0], [0, 0, 1, 0], [], []>} : vector<16x32xf32>, vector<128x32xf32>, vector<16x128xf32> -> vector<16x128xf32>
    %7 = arith.addf %3, %6 : vector<16x128xf32>
    %c0_6 = arith.constant 0 : index
    %c0_7 = arith.constant 0 : index
    %8 = vector.load %arg6[%c0_6, %c0_7] : memref<16x128xf32, #tpu.memory_space<vmem>>, vector<16x128xf32>
    tpu.vector_store %arg6[%c0_6, %c0_7], %7 {strides = array<i32>} : memref<16x128xf32, #tpu.memory_space<vmem>>, vector<16x128xf32>,
    %c0_i32_8 = arith.constant 0 : i32
    %9 = arith.cmpi eq, %arg2, %c0_i32_8 : i32
    %10 = arith.extui %9 : i1 to i32
    %c0_i32_9 = arith.constant 0 : i32
    %11 = arith.cmpi ne, %10, %c0_i32_9 : i32
    scf.if %11 {
      %c0_10 = arith.constant 0 : index
      %c0_11 = arith.constant 0 : index
      %12 = vector.load %arg6[%c0_10, %c0_11] : memref<16x128xf32, #tpu.memory_space<vmem>>, vector<16x128xf32>
      %c0_12 = arith.constant 0 : index
      %c0_13 = arith.constant 0 : index
      %13 = vector.load %arg5[%c0_12, %c0_13] : memref<16x128xf32, #tpu.memory_space<vmem>>, vector<16x128xf32>
      tpu.vector_store %arg5[%c0_12, %c0_13], %12 {strides = array<i32>} : memref<16x128xf32, #tpu.memory_space<vmem>>, vector<16x128xf32>,
    } else {
    }
    return
  }
  func.func @transform_0(%arg0: i32, %arg1: i32, %arg2: i32) -> (i32, i32) {
    %c0_i32 = arith.constant 0 : i32
    return %arg0, %arg2 : i32, i32
  }
  func.func @transform_1(%arg0: i32, %arg1: i32, %arg2: i32) -> (i32, i32) {
    %c0_i32 = arith.constant 0 : i32
    return %arg1, %arg2 : i32, i32
  }
  func.func @transform_2(%arg0: i32, %arg1: i32, %arg2: i32) -> (i32, i32) {
    %c0_i32 = arith.constant 0 : i32
    return %arg0, %arg1 : i32, i32
  }
}

</mosaic_0001>

<bundles_post_ra>
// kernel: tpu_custom_call.1
= control target key start
LH: loop header
LB: loop body
LE: loop exit
PB: predicated region body
PF: predicated region fallthrough
CT: control target
= control target key end

     0   :  { %vm38_vm0 = vcmask 261120   ;;  %s400_s0 = inlined_call_operand.vmem [shape: f32[16,32], index: 0, kind: input, shape index: {}]   ;;  %s401_s1 = inlined_call_operand.vmem [shape: f32[128,32], index: 1, kind: input, shape index: {}]   ;;  %s402_s2 = inlined_call_operand.hbm [shape: f32[16,128], index: 2, kind: output, shape index: {}]  }
   0x1   :  { %v37_v0 = vld [vmem:[%s401_s1 + $0x78] sm:$0xff]  ;;  %v36_v1 = vld [vmem:[%s401_s1 + $0x70] sm:$0xff]  ;;  %v35_v2 = vld [vmem:[%s401_s1 + $0x68] sm:$0xff] }
   0x2   :  { %231 = vmatprep.subr.msk.mxu0 %vm38_vm0, %v37_v0  ;;  %v20_v3 = vld [vmem:[%s400_s0] sm:$0xff] }
   0x3   :  { %232 = vmatpush3.xpose.msk.msra.mxu0 %vm38_vm0, %v37_v0  ;;  %263 = vmatprep.mubr.msk.f32.mxu0 %vm38_vm0, %v20_v3 }
   0x4   :  { %233 = vmatprep.subr.msk.mxu0 %vm38_vm0, %v36_v1 }
   0x7   :  { %234 = vmatpush3.xpose.msk.msra.mxu0 %vm38_vm0, %v36_v1 }
   0x8   :  { %7 = vsyncpa [#allocation4], 0  ;;  %235 = vmatprep.subr.msk.mxu0 %vm38_vm0, %v35_v2  ;;  %v34_v4 = vld [vmem:[%s401_s1 + $0x60] sm:$0xff]  ;;  %v33_v5 = vld [vmem:[%s401_s1 + $0x58] sm:$0xff]  ;;  %s291_s17 = smov [#allocation3]  }
   0x9   :  { %v32_v6 = vld [vmem:[%s401_s1 + $0x50] sm:$0xff]  ;;  %v31_v7 = vld [vmem:[%s401_s1 + $0x48] sm:$0xff]  ;;  %v30_v8 = vld [vmem:[%s401_s1 + $0x40] sm:$0xff]  ;;  %s184_s18 = sshll.u32 %s291_s17, 4  ;;  %s185_s18 = int_to_ptr.vmem [resolvable:$true] %s184_s18 }
   0xa   :  { %v29_v9 = vld [vmem:[%s401_s1 + $0x38] sm:$0xff]  ;;  %v28_v10 = vld [vmem:[%s401_s1 + $0x30] sm:$0xff]  ;;  %v27_v11 = vld [vmem:[%s401_s1 + $0x28] sm:$0xff]  ;;  %p274_p1 = scmp.lt.s32.totalorder %s185_s18, %s185_s18 }
   0xb   :  { %236 = vmatpush3.xpose.msk.msra.mxu0 %vm38_vm0, %v35_v2  ;;  %v26_v12 = vld [vmem:[%s401_s1 + $0x20] sm:$0xff]  ;;  %v25_v13 = vld [vmem:[%s401_s1 + $0x18] sm:$0xff]  ;;  %v24_v14 = vld [vmem:[%s401_s1 + $0x10] sm:$0xff] }
   0xc   :  { %237 = vmatprep.subr.msk.mxu0 %vm38_vm0, %v34_v4  ;;  %v23_v15 = vld [vmem:[%s401_s1 + $0x8] sm:$0xff]  ;;  %v22_v16 = vld [vmem:[%s401_s1] sm:$0xff]  ;;  %s269_s1 = scalar_lea.vmem %s185_s18, 256 }
   0xd   :  { %v21_v17 = vld [vmem:[%s400_s0 + $0x8] sm:$0xff]  ;;  %p270_p0 = scmp.ne.s32.totalorder %s185_s18, %s269_s1  ;;  %p275_p2 = scmp.lt.s32.totalorder %s269_s1, %s269_s1 }
   0xf   :  { %238 = vmatpush3.xpose.msk.msra.mxu0 %vm38_vm0, %v34_v4  ;;  %p276_p3 = por %p275_p2, %p274_p1 }
  0x10   :  { %239 = vmatprep.subr.msk.mxu0 %vm38_vm0, %v33_v5 }
  0x11   :  { %p277_p4 = pnand %p276_p3, %p270_p0 }
  0x13   :  { %240 = vmatpush3.xpose.msk.msra.mxu0 %vm38_vm0, %v33_v5 }
  0x14   :  { %241 = vmatprep.subr.msk.mxu0 %vm38_vm0, %v32_v6 }
  0x17   :  { %242 = vmatpush3.xpose.msk.msra.mxu0 %vm38_vm0, %v32_v6 }
  0x18   :  { %243 = vmatprep.subr.msk.mxu0 %vm38_vm0, %v31_v7 }
  0x1b   :  { %244 = vmatpush3.xpose.msk.msra.mxu0 %vm38_vm0, %v31_v7 }
  0x1c   :  { %245 = vmatprep.subr.msk.mxu0 %vm38_vm0, %v30_v8 }
  0x1f   :  { %246 = vmatpush3.xpose.msk.msra.mxu0 %vm38_vm0, %v30_v8 }
  0x20   :  { %247 = vmatprep.subr.msk.mxu0 %vm38_vm0, %v29_v9 }
  0x23   :  { %248 = vmatpush3.xpose.msk.msra.mxu0 %vm38_vm0, %v29_v9 }
  0x24   :  { %249 = vmatprep.subr.msk.mxu0 %vm38_vm0, %v28_v10 }
  0x27   :  { %250 = vmatpush3.xpose.msk.msra.mxu0 %vm38_vm0, %v28_v10 }
  0x28   :  { %251 = vmatprep.subr.msk.mxu0 %vm38_vm0, %v27_v11 }
  0x2b   :  { %252 = vmatpush3.xpose.msk.msra.mxu0 %vm38_vm0, %v27_v11 }
  0x2c   :  { %253 = vmatprep.subr.msk.mxu0 %vm38_vm0, %v26_v12 }
  0x2f   :  { %254 = vmatpush3.xpose.msk.msra.mxu0 %vm38_vm0, %v26_v12 }
  0x30   :  { %255 = vmatprep.subr.msk.mxu0 %vm38_vm0, %v25_v13 }
  0x33   :  { %256 = vmatpush3.xpose.msk.msra.mxu0 %vm38_vm0, %v25_v13 }
  0x34   :  { %257 = vmatprep.subr.msk.mxu0 %vm38_vm0, %v24_v14 }
  0x37   :  { %258 = vmatpush3.xpose.msk.msra.mxu0 %vm38_vm0, %v24_v14 }
  0x38   :  { %259 = vmatprep.subr.msk.mxu0 %vm38_vm0, %v23_v15 }
  0x3b   :  { %260 = vmatpush3.xpose.msk.msra.mxu0 %vm38_vm0, %v23_v15 }
  0x3c   :  { %261 = vmatprep.subr.msk.mxu0 %vm38_vm0, %v22_v16 }
  0x3f   :  { %262 = vmatpush3.xpose.msk.msra.mxu0 %vm38_vm0, %v22_v16 }
  0x42   :  { %264 = vmatmul.mubr.msk.f32.vlgmr.msra.gmra.mxu0 %vm38_vm0, %v21_v17 }
 0x102   :  { %v265_v18 = vpop.f32.mrf.mxu0 }
 0x103   :  { %178 = vst [vmem:[#allocation3 + $0x8] sm:$0xff] %v265_v18 }
 0x104   :  { %v159_v19 = vpop.f32.mrf.mxu0 }
 0x105   :  { %177 = vst [vmem:[#allocation3] sm:$0xff] %v159_v19 }
 0x106   :  { %280 = shalt.err (!%p277_p4)
}
 0x107   :  { %s292_s19 = smov 128   ;;  %s293_s20 = smov 8  }
 0x108   :  { %190 = dma.vmem_to_hbm [thread:$0]  %s185_s18, 256, %s402_s2, [#allocation4], %s292_s19, %s292_s19, %s293_s20  }
 0x109   :  { %289 = dma.done.wait [#allocation4], 256  }
 0x10a   :  { %290 = vsyncadd [#allocation4], 4294967040 }
 0x10b   :  { %194 = vsyncpa [#allocation4], 1 }

</bundles_post_ra>
